<compile_context>
chip_gen: v6e
topology: v6e:2x2x1
jax: 0.10.0
libtpu: 0.0.40
codegen_flags: <defaults>
</compile_context>

<pallas_src>
import functools

import jax
import jax.numpy as jnp
from jax.experimental import pallas as pl
from jax.experimental.pallas import tpu as pltpu

_ONE_SIXTH = 1.0 / 6.0


# --------------------------------------------------------------------------- #
# Kernels (pure elementwise, VPU only — HBM-bandwidth bound)
# --------------------------------------------------------------------------- #
def _h_swish_kernel_native(x_ref, o_ref):
    # Compute in the input dtype (f32, or bf16 on chips with a bf16 VPU).
    x = x_ref[...]
    o_ref[...] = (x * (jnp.clip(x + 3.0, 0.0, 6.0) * _ONE_SIXTH)).astype(o_ref.dtype)


def _h_swish_kernel_f32(x_ref, o_ref):
    # f32 compute path (required on v5e for sub-f32 inputs: no bf16 VALU).
    x = x_ref[...].astype(jnp.float32)
    o_ref[...] = (x * (jnp.clip(x + 3.0, 0.0, 6.0) * _ONE_SIXTH)).astype(o_ref.dtype)


def _h_swish_jnp(x):
    xf = x.astype(jnp.float32)
    return (xf * jnp.clip(xf + 3.0, 0.0, 6.0) * _ONE_SIXTH).astype(x.dtype)


# --------------------------------------------------------------------------- #
# Per-generation tiling defaults
# --------------------------------------------------------------------------- #
@functools.lru_cache(maxsize=None)
def _tpu_generation():
    try:
        kind = jax.devices()[0].device_kind.lower()
    except Exception:  # non-TPU backend or query failure -> conservative defaults
        return 0
    for gen in (7, 6, 5, 4, 3):
        if f"v{gen}" in kind or f"tpu{gen}" in kind:
            return gen
    return 0


def _tiling_defaults():
    gen = _tpu_generation()
    if gen >= 7:
        # 2 TC/chip, 3.2 TB/s HBM, but only 64 MiB VMEM: big blocks, >=4 blocks.
        return 8 << 20, 48 << 20, 4
    if gen == 6:
        # 1 TC, 1.4 TB/s HBM, 128 MiB physical VMEM (32 MiB scoped default).
        return 4 << 20, 40 << 20, 2
    # v5e / older / unknown: stay safely under the 16 MiB scoped-VMEM default.
    return 2 << 20, None, 2


# --------------------------------------------------------------------------- #
# Wrapper
# --------------------------------------------------------------------------- #
@functools.partial(jax.jit, static_argnames=("target_block_bytes",))
def h_swish(x: jax.Array, *, target_block_bytes: int | None = None) -> jax.Array:
    """Applies hard-swish elementwise. Accepts any shape; returns same shape/dtype."""
    orig_shape = x.shape
    orig_dtype = x.dtype
    n = x.size
    if n == 0:
        return x

    gen = _tpu_generation()
    default_block_bytes, vmem_limit, min_blocks = _tiling_defaults()
    block_bytes = target_block_bytes or default_block_bytes

    itemsize = jnp.dtype(orig_dtype).itemsize
    x_flat = x.reshape(-1)  # contiguous reshape: free bitcast under jit

    # Tiny tensors: dispatch overhead dominates; plain jnp is cheaper.
    if n < 8 * 128:
        return _h_swish_jnp(x_flat).reshape(orig_shape)

    # 128-aligned main slab; the (<128-element) ragged tail is handled with plain
    # jnp instead of a full-array pad + slice-back (no extra full HBM passes).
    n_main = (n // 128) * 128
    tail = n - n_main

    # Widest lane-dense last dim dividing the main slab (128 always works).
    width = 128
    for cand in (4096, 2048, 1024, 512, 256):
        if n_main % cand == 0:
            width = cand
            break
    rows = n_main // width
    slab_bytes = n_main * itemsize

    # Rows per block: ~block_bytes, rounded to the dtype's sublane packing.
    sublane = max(8, 32 // itemsize)
    tile_rows = (block_bytes // (width * itemsize)) // sublane * sublane
    tile_rows = max(sublane, tile_rows)

    # Never a single-step grid for non-trivial slabs: v7x needs >=2 (ideally >=4)
    # blocks so both TensorCores participate; >=2 also overlaps in/out DMA.
    if min_blocks > 1 and slab_bytes > (1 << 20):
        cap = -(-rows // min_blocks)                        # cdiv(rows, min_blocks)
        cap = max(sublane, -(-cap // sublane) * sublane)    # round up to sublane mult
        tile_rows = min(tile_rows, cap)

    if tile_rows >= rows:
        tile_rows = rows  # full extent: always a legal block shape
    grid = (pl.cdiv(rows, tile_rows),)  # ragged final block masked by Pallas

    # bf16 computes natively on v6e/v7x; f32 upcast elsewhere (f32 stays f32).
    use_native = (orig_dtype == jnp.float32) or (orig_dtype == jnp.bfloat16 and gen >= 6)
    kernel = _h_swish_kernel_native if use_native else _h_swish_kernel_f32

    x_main = x_flat if tail == 0 else x_flat[:n_main]
    x2d = x_main.reshape(rows, width)

    out2d = pl.pallas_call(
        kernel,
        out_shape=jax.ShapeDtypeStruct((rows, width), orig_dtype),
        grid_spec=pltpu.PrefetchScalarGridSpec(
            num_scalar_prefetch=0,
            grid=grid,
            in_specs=[pl.BlockSpec((tile_rows, width), lambda i: (i, 0))],
            out_specs=pl.BlockSpec((tile_rows, width), lambda i: (i, 0)),
        ),
        compiler_params=pltpu.CompilerParams(
            dimension_semantics=("parallel",),
            vmem_limit_bytes=vmem_limit,
        ),
        cost_estimate=pl.CostEstimate(
            flops=5 * n_main,
            transcendentals=0,
            bytes_accessed=2 * slab_bytes,
        ),
    )(x2d)

    out_flat = out2d.reshape(-1)
    if tail:
        out_flat = jnp.concatenate([out_flat, _h_swish_jnp(x_flat[n_main:])])
    return out_flat.reshape(orig_shape)


def _h_swish_ref(x):
    return x * jnp.clip(x + 3.0, 0.0, 6.0) / 6.0


if __name__ == "__main__":
    key = jax.random.PRNGKey(0)
    k0, k1, k2, k3 = jax.random.split(key, 4)

    # 1) Canonical NCHW activation (128-divisible -> copy-free, single block).
    x = jax.random.normal(k0, (2, 4, 16, 16), dtype=jnp.float32) * 4.0
    y = jax.block_until_ready(h_swish(x))
    assert y.shape == x.shape and y.dtype == x.dtype
    assert jnp.allclose(y, _h_swish_ref(x), atol=1e-6, rtol=1e-5)

    # 2) Irregular size (not a multiple of 128 -> aligned-prefix kernel + jnp tail).
    x2 = jax.random.normal(k1, (3, 5, 7, 11), dtype=jnp.float32) * 4.0
    y2 = jax.block_until_ready(h_swish(x2))
    assert y2.shape == x2.shape and y2.dtype == x2.dtype
    assert jnp.allclose(y2, _h_swish_ref(x2), atol=1e-6, rtol=1e-5)

    # 3) Multi-block grid with a ragged final block (exercises Pallas masking).
    x3 = jax.random.normal(k2, (1, 1, 120, 128), dtype=jnp.float32) * 4.0
    y3 = jax.block_until_ready(h_swish(x3, target_block_bytes=32 * 1024))
    assert y3.shape == x3.shape and y3.dtype == x3.dtype
    assert jnp.allclose(y3, _h_swish_ref(x3), atol=1e-6, rtol=1e-5)

    # 4) Larger slab (> 1 MiB) -> forced multi-block grid (megacore / DMA overlap).
    x4 = jax.random.normal(k3, (8, 16, 64, 64), dtype=jnp.float32) * 4.0
    y4 = jax.block_until_ready(h_swish(x4))
    assert y4.shape == x4.shape and y4.dtype == x4.dtype
    assert jnp.allclose(y4, _h_swish_ref(x4), atol=1e-6, rtol=1e-5)

    print("KERNEL_OK")
</pallas_src>

<mosaic_0001>
module attributes {stable_mosaic.version = 11 : i64} {
  func.func @_h_swish_kernel_native(%arg0: i32, %arg1: memref<1x2048xf32, #tpu.memory_space<vmem>>, %arg2: memref<1x2048xf32, #tpu.memory_space<vmem>>) attributes {dimension_semantics = [#tpu.dimension_semantics<parallel>], iteration_bounds = array<i64: 1>, scalar_prefetch = 0 : i64, scratch_operands = 0 : i64, tpu.core_type = #tpu.core_type<tc>, window_params = [{transform_indices = @transform_0, window_bounds = array<i64: 1, 2048>}, {transform_indices = @transform_1, window_bounds = array<i64: 1, 2048>}]} {
    %c0 = arith.constant 0 : index
    %c0_0 = arith.constant 0 : index
    %0 = vector.load %arg1[%c0, %c0_0] : memref<1x2048xf32, #tpu.memory_space<vmem>>, vector<1x2048xf32>
    %cst = arith.constant 3.000000e+00 : f32
    %1 = vector.broadcast %cst : f32 to vector<1x2048xf32>
    %2 = arith.addf %0, %1 : vector<1x2048xf32>
    %cst_1 = arith.constant 0.000000e+00 : f32
    %cst_2 = arith.constant 6.000000e+00 : f32
    %3 = vector.broadcast %cst_1 : f32 to vector<1x2048xf32>
    %4 = arith.maximumf %3, %2 : vector<1x2048xf32>
    %5 = vector.broadcast %cst_2 : f32 to vector<1x2048xf32>
    %6 = arith.minimumf %5, %4 : vector<1x2048xf32>
    %cst_3 = arith.constant 0.166666672 : f32
    %7 = vector.broadcast %cst_3 : f32 to vector<1x2048xf32>
    %8 = arith.mulf %6, %7 : vector<1x2048xf32>
    %9 = arith.mulf %0, %8 : vector<1x2048xf32>
    %c0_4 = arith.constant 0 : index
    %c0_5 = arith.constant 0 : index
    %10 = vector.load %arg2[%c0_4, %c0_5] : memref<1x2048xf32, #tpu.memory_space<vmem>>, vector<1x2048xf32>
    tpu.vector_store %arg2[%c0_4, %c0_5], %9 {strides = array<i32>} : memref<1x2048xf32, #tpu.memory_space<vmem>>, vector<1x2048xf32>,
    return
  }
  func.func @transform_0(%arg0: i32) -> (i32, i32) {
    %c0_i32 = arith.constant 0 : i32
    %c0_i32_0 = arith.constant 0 : i32
    return %arg0, %c0_i32 : i32, i32
  }
  func.func @transform_1(%arg0: i32) -> (i32, i32) {
    %c0_i32 = arith.constant 0 : i32
    %c0_i32_0 = arith.constant 0 : i32
    return %arg0, %c0_i32 : i32, i32
  }
}

</mosaic_0001>

<bundles_post_ra>
// kernel: h_swish.1
= control target key start
LH: loop header
LB: loop body
LE: loop exit
PB: predicated region body
PF: predicated region fallthrough
CT: control target
= control target key end

     0   :  { %s48_s0 = inlined_call_operand.vmem [shape: f32[1,2048], index: 0, kind: input, shape index: {}]   ;;  %s49_s1 = inlined_call_operand.vmem [shape: f32[1,2048], index: 1, kind: output, shape index: {}]  }
   0x1   :  { %v8_v0 = vld [vmem:[%s48_s0] sm:$0xff]  ;;  %v9_v1 = vld [vmem:[%s48_s0 + $0x8] sm:$0xff] }
   0x2   :  { %v10_v2 = vadd.f32 3.0, %v8_v0  ;;  %v11_v3 = vadd.f32 3.0, %v9_v1 }
   0x4   :  { %v12_v4 = vmax.f32 %v10_v2, 0.0  ;;  %v13_v5 = vmax.f32 %v11_v3, 0.0 }
   0x6   :  { %v14_v6 = vmin.f32 %v12_v4, 6.0  ;;  %v15_v7 = vmin.f32 %v13_v5, 6.0 }
   0x8   :  { %v16_v8 = vmul.f32 0.16666667, %v14_v6  ;;  %v17_v9 = vmul.f32 0.16666667, %v15_v7 }
   0xa   :  { %v18_v10 = vmul.f32 %v16_v8, %v8_v0  ;;  %v19_v11 = vmul.f32 %v17_v9, %v9_v1 }
   0xc   :  { %20 = vst [vmem:[%s49_s1] sm:$0xff] %v18_v10  ;;  %21 = vst [vmem:[%s49_s1 + $0x8] sm:$0xff] %v19_v11 }

</bundles_post_ra>
